<compile_context>
chip_gen: v7x
topology: tpu7x:2x2x1
jax: 0.10.0
libtpu: 0.0.40
codegen_flags: <defaults>
</compile_context>

<pallas_src>
import jax
import jax.numpy as jnp
from jax.experimental import pallas as pl
from jax.experimental.pallas import tpu as pltpu

_LANES_FALLBACK = 1024                 # pad target for large unaligned inputs
_TARGET_TILE_BYTES = 4 * 1024 * 1024   # ~4 MiB per tile (good on v5e/v6e/v7x)
_SMALL_UNALIGNED_BYTES = 4 * 1024 * 1024
_VMEM_LIMIT_BYTES = 32 * 1024 * 1024   # 2 bufs in + 2 bufs out of a 4 MiB tile


def _copy_kernel(x_ref, o_ref):
    # Elementwise pass-through: forward(x) == x.
    o_ref[...] = x_ref[...]


def _cdiv(a: int, b: int) -> int:
    return -(-a // b)


def _round_up(a: int, b: int) -> int:
    return _cdiv(a, b) * b


def _choose_tile_rows(rows: int, lanes: int, itemsize: int) -> int:
    """Pick a sublane-aligned row tile ~4 MiB, with >=2 tiles when possible."""
    sub = max(8, 32 // itemsize)          # 8 (f32), 16 (bf16), 32 (int8)
    if rows <= sub:
        return rows                       # single block == full array dims
    target = max(sub, (_TARGET_TILE_BYTES // (lanes * itemsize)) // sub * sub)
    # Cap so the grid has at least 2 tiles (megacore sharding on v7x).
    half = _round_up(_cdiv(rows, 2), sub)
    tile = min(target, half)
    return max(sub, min(tile, rows))


def _pallas_copy_2d(x2d: jax.Array) -> jax.Array:
    rows, lanes = x2d.shape
    dtype = x2d.dtype
    itemsize = jnp.dtype(dtype).itemsize
    tile_rows = _choose_tile_rows(rows, lanes, itemsize)
    grid = (_cdiv(rows, tile_rows),)
    return pl.pallas_call(
        _copy_kernel,
        out_shape=jax.ShapeDtypeStruct((rows, lanes), dtype),
        grid=grid,
        in_specs=[pl.BlockSpec((tile_rows, lanes), lambda i: (i, 0))],
        out_specs=pl.BlockSpec((tile_rows, lanes), lambda i: (i, 0)),
        compiler_params=pltpu.CompilerParams(
            dimension_semantics=("parallel",),
            vmem_limit_bytes=_VMEM_LIMIT_BYTES),
    )(x2d)


@jax.jit
def _identity_pallas(x: jax.Array) -> jax.Array:
    orig_shape = x.shape
    dtype = x.dtype
    total = x.size
    if total == 0:
        return x
    itemsize = jnp.dtype(dtype).itemsize

    # Fast path: lane-dense reshape with NO padding. Pick the largest
    # multiple-of-128 divisor of `total` (reshape of a contiguous array is
    # free in XLA, so the only HBM traffic is the kernel's read + write).
    lanes = None
    for cand in (4096, 2048, 1024, 512, 256, 128):
        if total % cand == 0:
            lanes = cand
            break

    if lanes is not None:
        x2d = x.reshape(total // lanes, lanes)
        y2d = _pallas_copy_2d(x2d)
        return y2d.reshape(orig_shape)

    # Unaligned total, small: one full-array block (masked boundary stores,
    # but still zero extra HBM passes).
    if total * itemsize <= _SMALL_UNALIGNED_BYTES:
        x2d = x.reshape(1, total)
        y2d = _pallas_copy_2d(x2d)
        return y2d.reshape(orig_shape)

    # Unaligned total, large: minimal pad to the next 1024 boundary, tiled
    # copy (ragged last tile handled by the grid cdiv above), then slice back.
    padded_total = _round_up(total, _LANES_FALLBACK)
    flat = jnp.pad(x.reshape(-1), (0, padded_total - total))
    x2d = flat.reshape(padded_total // _LANES_FALLBACK, _LANES_FALLBACK)
    y2d = _pallas_copy_2d(x2d)
    return y2d.reshape(-1)[:total].reshape(orig_shape)


def log_softmax_module_forward(x: jax.Array) -> jax.Array:
    """Pallas equivalent of LogSoftmax.forward (which is an identity)."""
    # Mirror the reference module's host-side side-effect print.
    print('call config LogSoftmax.forward')
    return _identity_pallas(x)


if __name__ == "__main__":
    # The module has no parameters (__init__ registers nothing), so the only
    # thing to construct is the input itself.
    key = jax.random.PRNGKey(0)
    x = jax.random.normal(key, (2, 4, 16, 16), dtype=jnp.float32)  # NCHW

    y = log_softmax_module_forward(x)
    y = jax.block_until_ready(y)

    # Correctness check against the reference semantics (identity).
    assert y.shape == x.shape and y.dtype == x.dtype
    assert bool(jnp.all(y == x))

    print("KERNEL_OK")
</pallas_src>

<mosaic_0001>
module attributes {stable_mosaic.version = 11 : i64} {
  func.func @_copy_kernel(%arg0: i32, %arg1: memref<1x2048xf32, #tpu.memory_space<vmem>>, %arg2: memref<1x2048xf32, #tpu.memory_space<vmem>>) attributes {dimension_semantics = [#tpu.dimension_semantics<parallel>], iteration_bounds = array<i64: 1>, scalar_prefetch = 0 : i64, scratch_operands = 0 : i64, tpu.core_type = #tpu.core_type<tc>, window_params = [{transform_indices = @transform_0, window_bounds = array<i64: 1, 2048>}, {transform_indices = @transform_1, window_bounds = array<i64: 1, 2048>}]} {
    %c0 = arith.constant 0 : index
    %c0_0 = arith.constant 0 : index
    %0 = vector.load %arg1[%c0, %c0_0] : memref<1x2048xf32, #tpu.memory_space<vmem>>, vector<1x2048xf32>
    %c0_1 = arith.constant 0 : index
    %c0_2 = arith.constant 0 : index
    %1 = vector.load %arg2[%c0_1, %c0_2] : memref<1x2048xf32, #tpu.memory_space<vmem>>, vector<1x2048xf32>
    tpu.vector_store %arg2[%c0_1, %c0_2], %0 {strides = array<i32>} : memref<1x2048xf32, #tpu.memory_space<vmem>>, vector<1x2048xf32>,
    return
  }
  func.func @transform_0(%arg0: i32) -> (i32, i32) {
    %c0_i32 = arith.constant 0 : i32
    %c0_i32_0 = arith.constant 0 : i32
    return %arg0, %c0_i32 : i32, i32
  }
  func.func @transform_1(%arg0: i32) -> (i32, i32) {
    %c0_i32 = arith.constant 0 : i32
    %c0_i32_0 = arith.constant 0 : i32
    return %arg0, %c0_i32 : i32, i32
  }
}

</mosaic_0001>

<bundles_post_ra>
// kernel: _identity_pallas.1
= control target key start
LH: loop header
LB: loop body
LE: loop exit
PB: predicated region body
PF: predicated region fallthrough
CT: control target
= control target key end

     0   :  { %s38_s0 = inlined_call_operand.vmem [shape: f32[1,2048], index: 0, kind: input, shape index: {}]   ;;  %s39_s1 = inlined_call_operand.vmem [shape: f32[1,2048], index: 1, kind: output, shape index: {}]  }
   0x1   :  { %v8_v0 = vld [vmem:[%s38_s0] sm:$0xff]  ;;  %v9_v1 = vld [vmem:[%s38_s0 + $0x8] sm:$0xff] }
   0x2   :  { %10 = vst [vmem:[%s39_s1] sm:$0xff] %v8_v0  ;;  %11 = vst [vmem:[%s39_s1 + $0x8] sm:$0xff] %v9_v1 }

</bundles_post_ra>
